<compile_context>
chip_gen: v7x
topology: tpu7x:2x2x1
jax: 0.10.0
libtpu: 0.0.40
codegen_flags: <defaults>
</compile_context>

<pallas_src>
import math
from functools import partial

import jax
import jax.numpy as jnp
import numpy as np
from jax.experimental import pallas as pl
from jax.experimental.pallas import tpu as pltpu


def _layer_norm(x, eps=1e-6):
    # LayerNorm with elementwise_affine=False (biased variance, matches PyTorch).
    mu = jnp.mean(x, axis=-1, keepdims=True)
    xc = x - mu
    var = jnp.mean(xc * xc, axis=-1, keepdims=True)
    return xc * jax.lax.rsqrt(var + eps)


def _pick_tile(n, preferred):
    """Largest tile <= preferred that divides n and is a multiple of 8, else n."""
    if n <= preferred:
        return n
    for t in range(preferred, 7, -1):
        if n % t == 0 and t % 8 == 0:
            return t
    return n


def _vmem_limit_bytes():
    """Generation-aware scoped-VMEM budget (~85% of physical VMEM)."""
    cap = 64 * 1024 * 1024          # safe default = v7x physical VMEM
    try:
        cap = int(pltpu.get_tpu_info().vmem_capacity_bytes)
    except Exception:               # narrow hw-query fallback only
        pass
    return int(cap * 0.85)


# ---------------------------------------------------------------------------
# Kernel 1: LN1 + adaLN(shift/scale) + fused QKV projection (head-major out).
# Grid: (B, N // ts)
# ---------------------------------------------------------------------------
def qkv_kernel(num_heads, head_dim,
               x_ref, mod_ref, w_ref, b_ref,
               q_ref, k_ref, v_ref):
    H = num_heads * head_dim
    x = x_ref[...].astype(jnp.float32)          # (TS, H)
    mod = mod_ref[...].astype(jnp.float32)      # (6, H)
    shift_msa = mod[0:1, :]
    scale_msa = mod[1:2, :]

    xn1 = (_layer_norm(x) * (1.0 + scale_msa) + shift_msa).astype(jnp.bfloat16)

    # One fused (TS, H) x (H, 3H) matmul for Q/K/V (fewer MXU start/drain
    # boundaries than three separate N=H matmuls).
    qkv = jnp.dot(xn1, w_ref[...], preferred_element_type=jnp.float32) + b_ref[...]

    sm_scale = 1.0 / math.sqrt(head_dim)
    q = qkv[:, 0:H] * sm_scale                  # fold softmax scale into Q once
    k = qkv[:, H:2 * H]
    v = qkv[:, 2 * H:3 * H]

    # Head split done ONCE per token tile (amortized over every q-tile/kv-step
    # of kernel 2, which then only touches whole per-head blocks).
    for h in range(num_heads):
        sl = slice(h * head_dim, (h + 1) * head_dim)
        q_ref[h] = q[:, sl].astype(q_ref.dtype)
        k_ref[h] = k[:, sl].astype(k_ref.dtype)
        v_ref[h] = v[:, sl].astype(v_ref.dtype)


# ---------------------------------------------------------------------------
# Kernel 2: flash attention (head-major) + out-proj + first gated residual.
# Grid: (B, N // tq, N // tk)  -- kv axis innermost ("arbitrary").
# ---------------------------------------------------------------------------
def attn_kernel(num_heads, head_dim,
                q_ref, k_ref, v_ref, x_ref, mod_ref, wo_ref, bo_ref,
                o_ref, m_scr, l_scr, acc_scr):
    ki = pl.program_id(2)
    nk = pl.num_programs(2)

    @pl.when(ki == 0)
    def _init():
        m_scr[...] = jnp.full(m_scr.shape, -jnp.inf, dtype=m_scr.dtype)
        l_scr[...] = jnp.zeros(l_scr.shape, dtype=l_scr.dtype)
        acc_scr[...] = jnp.zeros(acc_scr.shape, dtype=acc_scr.dtype)

    # Online softmax, one head per fori_loop step: per-head reads/writes are
    # whole blocks along the leading head axis (no masked lane accesses), and
    # the (TQ, TK) f32 temporaries have loop-bounded live ranges.
    def head_body(h, carry):
        q_h = q_ref[h]                       # (TQ, hd) bf16, pre-scaled by 1/sqrt(hd)
        k_h = k_ref[h]                       # (TK, hd) bf16
        v_h = v_ref[h]                       # (TK, hd) bf16
        s = jax.lax.dot_general(             # (TQ, TK), f32 accumulation
            q_h, k_h, dimension_numbers=(((1,), (1,)), ((), ())),
            preferred_element_type=jnp.float32)
        m_prev = m_scr[h]                    # (TQ, 1)
        m_new = jnp.maximum(m_prev, jnp.max(s, axis=-1, keepdims=True))
        alpha = jnp.exp(m_prev - m_new)
        p = jnp.exp(s - m_new)
        l_scr[h] = alpha * l_scr[h] + jnp.sum(p, axis=-1, keepdims=True)
        acc_scr[h] = alpha * acc_scr[h] + jnp.dot(
            p.astype(v_h.dtype), v_h, preferred_element_type=jnp.float32)
        m_scr[h] = m_new
        return carry

    jax.lax.fori_loop(0, num_heads, head_body, 0)

    @pl.when(ki == nk - 1)
    def _finalize():
        # Exact per-head normalization (once per q-tile) + per-head K=head_dim
        # out-projection matmuls accumulating into the (TQ, H) slab — avoids a
        # lane-crossing transpose/reshape of the accumulator.
        attn = jnp.dot((acc_scr[0] * (1.0 / l_scr[0])).astype(jnp.bfloat16),
                       wo_ref[0:head_dim, :], preferred_element_type=jnp.float32)
        for h in range(1, num_heads):
            attn = attn + jnp.dot(
                (acc_scr[h] * (1.0 / l_scr[h])).astype(jnp.bfloat16),
                wo_ref[h * head_dim:(h + 1) * head_dim, :],
                preferred_element_type=jnp.float32)
        attn = attn + bo_ref[...]

        xq = x_ref[...].astype(jnp.float32)       # (TQ, H) residual stream
        mod = mod_ref[...].astype(jnp.float32)    # (6, H)
        gate_msa = mod[2:3, :]
        o_ref[...] = (xq + gate_msa * attn).astype(o_ref.dtype)


# ---------------------------------------------------------------------------
# Kernel 3: LN2 + adaLN + MLP (streamed weights over 4H) + gated residual.
# Grid: (B, N // tn, FF // tf)  -- FF axis innermost ("arbitrary").
# ---------------------------------------------------------------------------
def mlp_kernel(x_ref, mod_ref, w1_ref, b1_ref, w2_ref, b2_ref,
               o_ref, xn2_scr, acc_scr):
    fi = pl.program_id(2)
    nf = pl.num_programs(2)

    @pl.when(fi == 0)
    def _init():
        x = x_ref[...].astype(jnp.float32)
        mod = mod_ref[...].astype(jnp.float32)
        shift_mlp = mod[3:4, :]
        scale_mlp = mod[4:5, :]
        xn2_scr[...] = (_layer_norm(x) * (1.0 + scale_mlp) + shift_mlp).astype(xn2_scr.dtype)
        acc_scr[...] = jnp.zeros(acc_scr.shape, dtype=acc_scr.dtype)

    # This grid step sees an (H, TF) slice of w1 and a (TF, H) slice of w2, so
    # the big MLP weights are never resident in full.
    h1 = jnp.dot(xn2_scr[...], w1_ref[...], preferred_element_type=jnp.float32) + b1_ref[...]
    h1 = jax.nn.gelu(h1, approximate=False).astype(jnp.bfloat16)   # exact GELU (nn.GELU default)
    acc_scr[...] = acc_scr[...] + jnp.dot(h1, w2_ref[...], preferred_element_type=jnp.float32)

    @pl.when(fi == nf - 1)
    def _fin():
        x = x_ref[...].astype(jnp.float32)
        mod = mod_ref[...].astype(jnp.float32)
        gate_mlp = mod[5:6, :]
        o_ref[...] = (x + gate_mlp * (acc_scr[...] + b2_ref[...])).astype(o_ref.dtype)


# ---------------------------------------------------------------------------
# Wrapper
# ---------------------------------------------------------------------------
def dit_block(x, c, params, num_heads, *,
              qkv_seq_tile=512, q_tile=512, kv_tile=512,
              mlp_seq_tile=512, mlp_ff_tile=2048):
    (wmod, bmod, wq, bq, wk, bk, wv, bv, wo, bo, w1, b1, w2, b2) = params
    B, N, H = x.shape
    assert H % num_heads == 0
    head_dim = H // num_heads
    FF = w1.shape[1]
    f32, bf16 = jnp.float32, jnp.bfloat16

    vmem_limit = _vmem_limit_bytes()

    # adaLN modulation hoisted out of the kernels (tiny matmul, huge weight).
    mod = jax.nn.silu(c.astype(f32)) @ wmod.astype(f32) + bmod.astype(f32)[0]
    # rows: shift_msa, scale_msa, gate_msa, shift_mlp, scale_mlp, gate_mlp
    mod = mod.reshape(B, 6, H)

    # bf16 weights for the MXU; biases stay f32 (added post-accumulation).
    w_qkv = jnp.concatenate([wq, wk, wv], axis=1).astype(bf16)   # fused (H, 3H)
    b_qkv = jnp.concatenate([bq, bk, bv], axis=1)                # (1, 3H)
    wo_b = wo.astype(bf16)
    w1_b, w2_b = w1.astype(bf16), w2.astype(bf16)

    # ---- Kernel 1: fused QKV projection, head-major outputs ----
    ts = _pick_tile(N, qkv_seq_tile)
    qkv_cost = pl.CostEstimate(
        flops=int(2 * B * N * H * 3 * H),
        transcendentals=0,
        bytes_accessed=int(B * N * H * 4 + H * 3 * H * 2 + 3 * B * N * H * 2))
    q, k, v = pl.pallas_call(
        partial(qkv_kernel, num_heads, head_dim),
        out_shape=tuple(jax.ShapeDtypeStruct((B, num_heads, N, head_dim), bf16)
                        for _ in range(3)),
        grid_spec=pltpu.PrefetchScalarGridSpec(
            num_scalar_prefetch=0,
            grid=(B, N // ts),
            in_specs=[
                pl.BlockSpec((None, ts, H), lambda b, s: (b, s, 0)),   # x tile
                pl.BlockSpec((None, 6, H), lambda b, s: (b, 0, 0)),    # modulation
                pl.BlockSpec((H, 3 * H), lambda b, s: (0, 0)),         # fused Wqkv
                pl.BlockSpec((1, 3 * H), lambda b, s: (0, 0)),         # fused bias
            ],
            out_specs=[pl.BlockSpec((None, num_heads, ts, head_dim),
                                    lambda b, s: (b, 0, s, 0))] * 3,
        ),
        compiler_params=pltpu.CompilerParams(
            dimension_semantics=("parallel", "parallel"),
            vmem_limit_bytes=vmem_limit),
        cost_estimate=qkv_cost,
    )(x, mod, w_qkv, b_qkv)

    # ---- Kernel 2: flash attention + out-proj + first gated residual ----
    tq = _pick_tile(N, q_tile)
    tk = _pick_tile(N, kv_tile)
    attn_cost = pl.CostEstimate(
        flops=int(4 * B * N * N * H + 2 * B * N * H * H),
        transcendentals=int(B * num_heads * N * N),
        bytes_accessed=int(B * N * H * 2 * (1 + 2 * (N // tq))
                           + 2 * B * N * H * 4 + H * H * 2))
    x_attn = pl.pallas_call(
        partial(attn_kernel, num_heads, head_dim),
        out_shape=jax.ShapeDtypeStruct((B, N, H), f32),
        grid_spec=pltpu.PrefetchScalarGridSpec(
            num_scalar_prefetch=0,
            grid=(B, N // tq, N // tk),
            in_specs=[
                pl.BlockSpec((None, num_heads, tq, head_dim),
                             lambda b, qi, ki: (b, 0, qi, 0)),            # Q (head-major)
                pl.BlockSpec((None, num_heads, tk, head_dim),
                             lambda b, qi, ki: (b, 0, ki, 0)),            # K
                pl.BlockSpec((None, num_heads, tk, head_dim),
                             lambda b, qi, ki: (b, 0, ki, 0)),            # V
                pl.BlockSpec((None, tq, H), lambda b, qi, ki: (b, qi, 0)),  # residual x
                pl.BlockSpec((None, 6, H), lambda b, qi, ki: (b, 0, 0)),    # modulation
                pl.BlockSpec((H, H), lambda b, qi, ki: (0, 0)),             # Wo
                pl.BlockSpec((1, H), lambda b, qi, ki: (0, 0)),             # bo
            ],
            out_specs=pl.BlockSpec((None, tq, H), lambda b, qi, ki: (b, qi, 0)),
            scratch_shapes=[
                pltpu.VMEM((num_heads, tq, 1), jnp.float32),          # running max
                pltpu.VMEM((num_heads, tq, 1), jnp.float32),          # running denom
                pltpu.VMEM((num_heads, tq, head_dim), jnp.float32),   # per-head acc
            ],
        ),
        compiler_params=pltpu.CompilerParams(
            dimension_semantics=("parallel", "parallel", "arbitrary"),
            vmem_limit_bytes=vmem_limit),
        cost_estimate=attn_cost,
    )(q, k, v, x, mod, wo_b, bo)

    # ---- Kernel 3: LN2 + adaLN + MLP (streamed weights) + gated residual ----
    tn = _pick_tile(N, mlp_seq_tile)
    tf = _pick_tile(FF, mlp_ff_tile)
    mlp_cost = pl.CostEstimate(
        flops=int(4 * B * N * H * FF),
        transcendentals=int(B * N * FF),
        bytes_accessed=int(2 * B * N * H * 4 + 2 * H * FF * 2))
    out = pl.pallas_call(
        mlp_kernel,
        out_shape=jax.ShapeDtypeStruct((B, N, H), x.dtype),
        grid_spec=pltpu.PrefetchScalarGridSpec(
            num_scalar_prefetch=0,
            grid=(B, N // tn, FF // tf),
            in_specs=[
                pl.BlockSpec((None, tn, H), lambda b, i, f: (b, i, 0)),   # post-attn x
                pl.BlockSpec((None, 6, H), lambda b, i, f: (b, 0, 0)),    # modulation
                pl.BlockSpec((H, tf), lambda b, i, f: (0, f)),            # w1 slice (streamed)
                pl.BlockSpec((1, tf), lambda b, i, f: (0, f)),            # b1 slice
                pl.BlockSpec((tf, H), lambda b, i, f: (f, 0)),            # w2 slice (streamed)
                pl.BlockSpec((1, H), lambda b, i, f: (0, 0)),             # b2
            ],
            out_specs=pl.BlockSpec((None, tn, H), lambda b, i, f: (b, i, 0)),
            scratch_shapes=[
                pltpu.VMEM((tn, H), jnp.bfloat16),   # cached LN2+adaLN activations
                pltpu.VMEM((tn, H), jnp.float32),    # MLP output accumulator
            ],
        ),
        compiler_params=pltpu.CompilerParams(
            dimension_semantics=("parallel", "parallel", "arbitrary"),
            vmem_limit_bytes=vmem_limit),
        cost_estimate=mlp_cost,
    )(x_attn, mod, w1_b, b1, w2_b, b2)
    return out


# ---------------------------------------------------------------------------
# Pure-JAX reference (same math as the PyTorch module) and test harness
# ---------------------------------------------------------------------------
def ref_dit_block(x, c, params, num_heads):
    (wmod, bmod, wq, bq, wk, bk, wv, bv, wo, bo, w1, b1, w2, b2) = params
    B, N, H = x.shape
    hd = H // num_heads

    def ln(v):
        mu = v.mean(-1, keepdims=True)
        var = ((v - mu) ** 2).mean(-1, keepdims=True)
        return (v - mu) / jnp.sqrt(var + 1e-6)

    mod = jax.nn.silu(c) @ wmod + bmod[0]
    shift_msa, scale_msa, gate_msa, shift_mlp, scale_mlp, gate_mlp = jnp.split(mod, 6, axis=1)

    xn1 = ln(x) * (1 + scale_msa[:, None, :]) + shift_msa[:, None, :]
    q = (xn1 @ wq + bq[0]).reshape(B, N, num_heads, hd).transpose(0, 2, 1, 3)
    k = (xn1 @ wk + bk[0]).reshape(B, N, num_heads, hd).transpose(0, 2, 1, 3)
    v = (xn1 @ wv + bv[0]).reshape(B, N, num_heads, hd).transpose(0, 2, 1, 3)
    s = jnp.einsum('bhqd,bhkd->bhqk', q, k) / math.sqrt(hd)
    p = jax.nn.softmax(s, axis=-1)
    ao = jnp.einsum('bhqk,bhkd->bhqd', p, v).transpose(0, 2, 1, 3).reshape(B, N, H)
    ao = ao @ wo + bo[0]
    x = x + gate_msa[:, None, :] * ao

    xn2 = ln(x) * (1 + scale_mlp[:, None, :]) + shift_mlp[:, None, :]
    mlp = jax.nn.gelu(xn2 @ w1 + b1[0], approximate=False) @ w2 + b2[0]
    return x + gate_mlp[:, None, :] * mlp


def init_params(key, hidden):
    H = hidden
    shapes = [
        (H, 6 * H), (1, 6 * H),      # adaLN modulation linear
        (H, H), (1, H),              # Wq, bq
        (H, H), (1, H),              # Wk, bk
        (H, H), (1, H),              # Wv, bv
        (H, H), (1, H),              # out_proj
        (H, 4 * H), (1, 4 * H),      # mlp fc1
        (4 * H, H), (1, H),          # mlp fc2
    ]
    keys = jax.random.split(key, len(shapes))
    params = []
    for k, s in zip(keys, shapes):
        params.append(0.05 * jax.random.normal(k, s, dtype=jnp.float32))
    return tuple(params)


if __name__ == "__main__":
    B, N, H, num_heads = 2, 8, 32, 4

    root = jax.random.PRNGKey(0)
    kx, kc, kp = jax.random.split(root, 3)
    x = jax.random.normal(kx, (B, N, H), dtype=jnp.float32)
    c = jax.random.normal(kc, (B, H), dtype=jnp.float32)
    params = init_params(kp, H)

    out = jax.block_until_ready(dit_block(x, c, params, num_heads))
    ref = jax.block_until_ready(ref_dit_block(x, c, params, num_heads))

    # bf16 matmul operands => slightly looser tolerance than pure f32.
    np.testing.assert_allclose(np.asarray(out), np.asarray(ref), rtol=2e-2, atol=2e-2)

    print("KERNEL_OK")
</pallas_src>

<mosaic_0001>
module attributes {stable_mosaic.version = 11 : i64} {
  func.func @qkv_kernel(%arg0: i32, %arg1: i32, %arg2: memref<1x8x32xf32, #tpu.memory_space<vmem>>, %arg3: memref<1x6x32xf32, #tpu.memory_space<vmem>>, %arg4: memref<32x96xbf16, #tpu.memory_space<vmem>>, %arg5: memref<1x96xf32, #tpu.memory_space<vmem>>, %arg6: memref<1x4x8x8xbf16, #tpu.memory_space<vmem>>, %arg7: memref<1x4x8x8xbf16, #tpu.memory_space<vmem>>, %arg8: memref<1x4x8x8xbf16, #tpu.memory_space<vmem>>) attributes {dimension_semantics = [#tpu.dimension_semantics<parallel>, #tpu.dimension_semantics<parallel>], iteration_bounds = array<i64: 2, 1>, scalar_prefetch = 0 : i64, scratch_operands = 0 : i64, tpu.core_type = #tpu.core_type<tc>, window_params = [{transform_indices = @transform_0, window_bounds = array<i64: 1, 8, 32>}, {transform_indices = @transform_1, window_bounds = array<i64: 1, 6, 32>}, {pipeline_mode = #tpu.pipeline_mode<synchronous>, transform_indices = @transform_2, window_bounds = array<i64: 32, 96>}, {pipeline_mode = #tpu.pipeline_mode<synchronous>, transform_indices = @transform_3, window_bounds = array<i64: 1, 96>}, {transform_indices = @transform_4, window_bounds = array<i64: 1, 4, 8, 8>}, {transform_indices = @transform_5, window_bounds = array<i64: 1, 4, 8, 8>}, {transform_indices = @transform_6, window_bounds = array<i64: 1, 4, 8, 8>}]} {
    %c0 = arith.constant 0 : index
    %c0_0 = arith.constant 0 : index
    %c0_1 = arith.constant 0 : index
    %0 = vector.load %arg2[%c0, %c0_0, %c0_1] : memref<1x8x32xf32, #tpu.memory_space<vmem>>, vector<1x8x32xf32>
    %1 = vector.shape_cast %0 : vector<1x8x32xf32> to vector<8x32xf32>
    %c0_2 = arith.constant 0 : index
    %c0_3 = arith.constant 0 : index
    %c0_4 = arith.constant 0 : index
    %2 = vector.load %arg3[%c0_2, %c0_3, %c0_4] : memref<1x6x32xf32, #tpu.memory_space<vmem>>, vector<1x6x32xf32>
    %3 = vector.shape_cast %2 : vector<1x6x32xf32> to vector<6x32xf32>
    %4 = vector.extract_strided_slice %3 {offsets = [0, 0], sizes = [1, 32], strides = [1, 1]} : vector<6x32xf32> to vector<1x32xf32>
    %5 = vector.extract_strided_slice %3 {offsets = [1, 0], sizes = [1, 32], strides = [1, 1]} : vector<6x32xf32> to vector<1x32xf32>
    %cst = arith.constant dense<0.000000e+00> : vector<8xf32>
    %6 = vector.multi_reduction <add>, %1, %cst [1] : vector<8x32xf32> to vector<8xf32>
    %7 = vector.shape_cast %6 : vector<8xf32> to vector<8x1xf32>
    %cst_5 = arith.constant 3.200000e+01 : f32
    %8 = vector.broadcast %cst_5 : f32 to vector<8x1xf32>
    %9 = arith.divf %7, %8 : vector<8x1xf32>
    %10 = vector.broadcast %9 : vector<8x1xf32> to vector<8x32xf32>
    %11 = arith.subf %1, %10 : vector<8x32xf32>
    %12 = arith.mulf %11, %11 : vector<8x32xf32>
    %cst_6 = arith.constant dense<0.000000e+00> : vector<8xf32>
    %13 = vector.multi_reduction <add>, %12, %cst_6 [1] : vector<8x32xf32> to vector<8xf32>
    %14 = vector.shape_cast %13 : vector<8xf32> to vector<8x1xf32>
    %cst_7 = arith.constant 3.200000e+01 : f32
    %15 = vector.broadcast %cst_7 : f32 to vector<8x1xf32>
    %16 = arith.divf %14, %15 : vector<8x1xf32>
    %cst_8 = arith.constant 9.99999997E-7 : f32
    %17 = vector.broadcast %cst_8 : f32 to vector<8x1xf32>
    %18 = arith.addf %16, %17 : vector<8x1xf32>
    %19 = math.rsqrt %18 : vector<8x1xf32>
    %20 = vector.broadcast %19 : vector<8x1xf32> to vector<8x32xf32>
    %21 = arith.mulf %11, %20 : vector<8x32xf32>
    %cst_9 = arith.constant 1.000000e+00 : f32
    %22 = vector.broadcast %cst_9 : f32 to vector<1x32xf32>
    %23 = arith.addf %22, %5 : vector<1x32xf32>
    %24 = vector.broadcast %23 : vector<1x32xf32> to vector<8x32xf32>
    %25 = arith.mulf %21, %24 : vector<8x32xf32>
    %26 = vector.broadcast %4 : vector<1x32xf32> to vector<8x32xf32>
    %27 = arith.addf %25, %26 : vector<8x32xf32>
    %28 = arith.truncf %27 : vector<8x32xf32> to vector<8x32xbf16>
    %c0_10 = arith.constant 0 : index
    %c0_11 = arith.constant 0 : index
    %29 = vector.load %arg4[%c0_10, %c0_11] : memref<32x96xbf16, #tpu.memory_space<vmem>>, vector<32x96xbf16>
    %cst_12 = arith.constant dense<0.000000e+00> : vector<8x96xf32>
    %30 = tpu.matmul %28, %29, %cst_12 {dimension_numbers = #tpu.dot_dimension_numbers<[1], [0], [0], [1], [0, 0, 1, 1], [], []>} : vector<8x32xbf16>, vector<32x96xbf16>, vector<8x96xf32> -> vector<8x96xf32>
    %c0_13 = arith.constant 0 : index
    %c0_14 = arith.constant 0 : index
    %31 = vector.load %arg5[%c0_13, %c0_14] : memref<1x96xf32, #tpu.memory_space<vmem>>, vector<1x96xf32>
    %32 = vector.broadcast %31 : vector<1x96xf32> to vector<8x96xf32>
    %33 = arith.addf %30, %32 : vector<8x96xf32>
    %34 = vector.extract_strided_slice %33 {offsets = [0, 0], sizes = [8, 32], strides = [1, 1]} : vector<8x96xf32> to vector<8x32xf32>
    %cst_15 = arith.constant 0.353553385 : f32
    %35 = vector.broadcast %cst_15 : f32 to vector<8x32xf32>
    %36 = arith.mulf %34, %35 : vector<8x32xf32>
    %37 = vector.extract_strided_slice %33 {offsets = [0, 32], sizes = [8, 32], strides = [1, 1]} : vector<8x96xf32> to vector<8x32xf32>
    %38 = vector.extract_strided_slice %33 {offsets = [0, 64], sizes = [8, 32], strides = [1, 1]} : vector<8x96xf32> to vector<8x32xf32>
    %39 = vector.extract_strided_slice %36 {offsets = [0, 0], sizes = [8, 8], strides = [1, 1]} : vector<8x32xf32> to vector<8x8xf32>
    %40 = arith.truncf %39 : vector<8x8xf32> to vector<8x8xbf16>
    %c0_16 = arith.constant 0 : index
    %c0_17 = arith.constant 0 : index
    %c0_18 = arith.constant 0 : index
    %c0_19 = arith.constant 0 : index
    %41 = vector.load %arg6[%c0_16, %c0_17, %c0_18, %c0_19] : memref<1x4x8x8xbf16, #tpu.memory_space<vmem>>, vector<1x1x8x8xbf16>
    %42 = vector.shape_cast %41 : vector<1x1x8x8xbf16> to vector<8x8xbf16>
    %43 = vector.shape_cast %40 : vector<8x8xbf16> to vector<1x1x8x8xbf16>
    tpu.vector_store %arg6[%c0_16, %c0_17, %c0_18, %c0_19], %43 {strides = array<i32>} : memref<1x4x8x8xbf16, #tpu.memory_space<vmem>>, vector<1x1x8x8xbf16>,
    %44 = vector.extract_strided_slice %37 {offsets = [0, 0], sizes = [8, 8], strides = [1, 1]} : vector<8x32xf32> to vector<8x8xf32>
    %45 = arith.truncf %44 : vector<8x8xf32> to vector<8x8xbf16>
    %c0_20 = arith.constant 0 : index
    %c0_21 = arith.constant 0 : index
    %c0_22 = arith.constant 0 : index
    %c0_23 = arith.constant 0 : index
    %46 = vector.load %arg7[%c0_20, %c0_21, %c0_22, %c0_23] : memref<1x4x8x8xbf16, #tpu.memory_space<vmem>>, vector<1x1x8x8xbf16>
    %47 = vector.shape_cast %46 : vector<1x1x8x8xbf16> to vector<8x8xbf16>
    %48 = vector.shape_cast %45 : vector<8x8xbf16> to vector<1x1x8x8xbf16>
    tpu.vector_store %arg7[%c0_20, %c0_21, %c0_22, %c0_23], %48 {strides = array<i32>} : memref<1x4x8x8xbf16, #tpu.memory_space<vmem>>, vector<1x1x8x8xbf16>,
    %49 = vector.extract_strided_slice %38 {offsets = [0, 0], sizes = [8, 8], strides = [1, 1]} : vector<8x32xf32> to vector<8x8xf32>
    %50 = arith.truncf %49 : vector<8x8xf32> to vector<8x8xbf16>
    %c0_24 = arith.constant 0 : index
    %c0_25 = arith.constant 0 : index
    %c0_26 = arith.constant 0 : index
    %c0_27 = arith.constant 0 : index
    %51 = vector.load %arg8[%c0_24, %c0_25, %c0_26, %c0_27] : memref<1x4x8x8xbf16, #tpu.memory_space<vmem>>, vector<1x1x8x8xbf16>
    %52 = vector.shape_cast %51 : vector<1x1x8x8xbf16> to vector<8x8xbf16>
    %53 = vector.shape_cast %50 : vector<8x8xbf16> to vector<1x1x8x8xbf16>
    tpu.vector_store %arg8[%c0_24, %c0_25, %c0_26, %c0_27], %53 {strides = array<i32>} : memref<1x4x8x8xbf16, #tpu.memory_space<vmem>>, vector<1x1x8x8xbf16>,
    %54 = vector.extract_strided_slice %36 {offsets = [0, 8], sizes = [8, 8], strides = [1, 1]} : vector<8x32xf32> to vector<8x8xf32>
    %55 = arith.truncf %54 : vector<8x8xf32> to vector<8x8xbf16>
    %c0_28 = arith.constant 0 : index
    %c1 = arith.constant 1 : index
    %c0_29 = arith.constant 0 : index
    %c0_30 = arith.constant 0 : index
    %56 = vector.load %arg6[%c0_28, %c1, %c0_29, %c0_30] : memref<1x4x8x8xbf16, #tpu.memory_space<vmem>>, vector<1x1x8x8xbf16>
    %57 = vector.shape_cast %56 : vector<1x1x8x8xbf16> to vector<8x8xbf16>
    %58 = vector.shape_cast %55 : vector<8x8xbf16> to vector<1x1x8x8xbf16>
    tpu.vector_store %arg6[%c0_28, %c1, %c0_29, %c0_30], %58 {strides = array<i32>} : memref<1x4x8x8xbf16, #tpu.memory_space<vmem>>, vector<1x1x8x8xbf16>,
    %59 = vector.extract_strided_slice %37 {offsets = [0, 8], sizes = [8, 8], strides = [1, 1]} : vector<8x32xf32> to vector<8x8xf32>
    %60 = arith.truncf %59 : vector<8x8xf32> to vector<8x8xbf16>
    %c0_31 = arith.constant 0 : index
    %c1_32 = arith.constant 1 : index
    %c0_33 = arith.constant 0 : index
    %c0_34 = arith.constant 0 : index
    %61 = vector.load %arg7[%c0_31, %c1_32, %c0_33, %c0_34] : memref<1x4x8x8xbf16, #tpu.memory_space<vmem>>, vector<1x1x8x8xbf16>
    %62 = vector.shape_cast %61 : vector<1x1x8x8xbf16> to vector<8x8xbf16>
    %63 = vector.shape_cast %60 : vector<8x8xbf16> to vector<1x1x8x8xbf16>
    tpu.vector_store %arg7[%c0_31, %c1_32, %c0_33, %c0_34], %63 {strides = array<i32>} : memref<1x4x8x8xbf16, #tpu.memory_space<vmem>>, vector<1x1x8x8xbf16>,
    %64 = vector.extract_strided_slice %38 {offsets = [0, 8], sizes = [8, 8], strides = [1, 1]} : vector<8x32xf32> to vector<8x8xf32>
    %65 = arith.truncf %64 : vector<8x8xf32> to vector<8x8xbf16>
    %c0_35 = arith.constant 0 : index
    %c1_36 = arith.constant 1 : index
    %c0_37 = arith.constant 0 : index
    %c0_38 = arith.constant 0 : index
    %66 = vector.load %arg8[%c0_35, %c1_36, %c0_37, %c0_38] : memref<1x4x8x8xbf16, #tpu.memory_space<vmem>>, vector<1x1x8x8xbf16>
    %67 = vector.shape_cast %66 : vector<1x1x8x8xbf16> to vector<8x8xbf16>
    %68 = vector.shape_cast %65 : vector<8x8xbf16> to vector<1x1x8x8xbf16>
    tpu.vector_store %arg8[%c0_35, %c1_36, %c0_37, %c0_38], %68 {strides = array<i32>} : memref<1x4x8x8xbf16, #tpu.memory_space<vmem>>, vector<1x1x8x8xbf16>,
    %69 = vector.extract_strided_slice %36 {offsets = [0, 16], sizes = [8, 8], strides = [1, 1]} : vector<8x32xf32> to vector<8x8xf32>
    %70 = arith.truncf %69 : vector<8x8xf32> to vector<8x8xbf16>
    %c0_39 = arith.constant 0 : index
    %c2 = arith.constant 2 : index
    %c0_40 = arith.constant 0 : index
    %c0_41 = arith.constant 0 : index
    %71 = vector.load %arg6[%c0_39, %c2, %c0_40, %c0_41] : memref<1x4x8x8xbf16, #tpu.memory_space<vmem>>, vector<1x1x8x8xbf16>
    %72 = vector.shape_cast %71 : vector<1x1x8x8xbf16> to vector<8x8xbf16>
    %73 = vector.shape_cast %70 : vector<8x8xbf16> to vector<1x1x8x8xbf16>
    tpu.vector_store %arg6[%c0_39, %c2, %c0_40, %c0_41], %73 {strides = array<i32>} : memref<1x4x8x8xbf16, #tpu.memory_space<vmem>>, vector<1x1x8x8xbf16>,
    %74 = vector.extract_strided_slice %37 {offsets = [0, 16], sizes = [8, 8], strides = [1, 1]} : vector<8x32xf32> to vector<8x8xf32>
    %75 = arith.truncf %74 : vector<8x8xf32> to vector<8x8xbf16>
    %c0_42 = arith.constant 0 : index
    %c2_43 = arith.constant 2 : index
    %c0_44 = arith.constant 0 : index
    %c0_45 = arith.constant 0 : index
    %76 = vector.load %arg7[%c0_42, %c2_43, %c0_44, %c0_45] : memref<1x4x8x8xbf16, #tpu.memory_space<vmem>>, vector<1x1x8x8xbf16>
    %77 = vector.shape_cast %76 : vector<1x1x8x8xbf16> to vector<8x8xbf16>
    %78 = vector.shape_cast %75 : vector<8x8xbf16> to vector<1x1x8x8xbf16>
    tpu.vector_store %arg7[%c0_42, %c2_43, %c0_44, %c0_45], %78 {strides = array<i32>} : memref<1x4x8x8xbf16, #tpu.memory_space<vmem>>, vector<1x1x8x8xbf16>,
    %79 = vector.extract_strided_slice %38 {offsets = [0, 16], sizes = [8, 8], strides = [1, 1]} : vector<8x32xf32> to vector<8x8xf32>
    %80 = arith.truncf %79 : vector<8x8xf32> to vector<8x8xbf16>
    %c0_46 = arith.constant 0 : index
    %c2_47 = arith.constant 2 : index
    %c0_48 = arith.constant 0 : index
    %c0_49 = arith.constant 0 : index
    %81 = vector.load %arg8[%c0_46, %c2_47, %c0_48, %c0_49] : memref<1x4x8x8xbf16, #tpu.memory_space<vmem>>, vector<1x1x8x8xbf16>
    %82 = vector.shape_cast %81 : vector<1x1x8x8xbf16> to vector<8x8xbf16>
    %83 = vector.shape_cast %80 : vector<8x8xbf16> to vector<1x1x8x8xbf16>
    tpu.vector_store %arg8[%c0_46, %c2_47, %c0_48, %c0_49], %83 {strides = array<i32>} : memref<1x4x8x8xbf16, #tpu.memory_space<vmem>>, vector<1x1x8x8xbf16>,
    %84 = vector.extract_strided_slice %36 {offsets = [0, 24], sizes = [8, 8], strides = [1, 1]} : vector<8x32xf32> to vector<8x8xf32>
    %85 = arith.truncf %84 : vector<8x8xf32> to vector<8x8xbf16>
    %c0_50 = arith.constant 0 : index
    %c3 = arith.constant 3 : index
    %c0_51 = arith.constant 0 : index
    %c0_52 = arith.constant 0 : index
    %86 = vector.load %arg6[%c0_50, %c3, %c0_51, %c0_52] : memref<1x4x8x8xbf16, #tpu.memory_space<vmem>>, vector<1x1x8x8xbf16>
    %87 = vector.shape_cast %86 : vector<1x1x8x8xbf16> to vector<8x8xbf16>
    %88 = vector.shape_cast %85 : vector<8x8xbf16> to vector<1x1x8x8xbf16>
    tpu.vector_store %arg6[%c0_50, %c3, %c0_51, %c0_52], %88 {strides = array<i32>} : memref<1x4x8x8xbf16, #tpu.memory_space<vmem>>, vector<1x1x8x8xbf16>,
    %89 = vector.extract_strided_slice %37 {offsets = [0, 24], sizes = [8, 8], strides = [1, 1]} : vector<8x32xf32> to vector<8x8xf32>
    %90 = arith.truncf %89 : vector<8x8xf32> to vector<8x8xbf16>
    %c0_53 = arith.constant 0 : index
    %c3_54 = arith.constant 3 : index
    %c0_55 = arith.constant 0 : index
    %c0_56 = arith.constant 0 : index
    %91 = vector.load %arg7[%c0_53, %c3_54, %c0_55, %c0_56] : memref<1x4x8x8xbf16, #tpu.memory_space<vmem>>, vector<1x1x8x8xbf16>
    %92 = vector.shape_cast %91 : vector<1x1x8x8xbf16> to vector<8x8xbf16>
    %93 = vector.shape_cast %90 : vector<8x8xbf16> to vector<1x1x8x8xbf16>
    tpu.vector_store %arg7[%c0_53, %c3_54, %c0_55, %c0_56], %93 {strides = array<i32>} : memref<1x4x8x8xbf16, #tpu.memory_space<vmem>>, vector<1x1x8x8xbf16>,
    %94 = vector.extract_strided_slice %38 {offsets = [0, 24], sizes = [8, 8], strides = [1, 1]} : vector<8x32xf32> to vector<8x8xf32>
    %95 = arith.truncf %94 : vector<8x8xf32> to vector<8x8xbf16>
    %c0_57 = arith.constant 0 : index
    %c3_58 = arith.constant 3 : index
    %c0_59 = arith.constant 0 : index
    %c0_60 = arith.constant 0 : index
    %96 = vector.load %arg8[%c0_57, %c3_58, %c0_59, %c0_60] : memref<1x4x8x8xbf16, #tpu.memory_space<vmem>>, vector<1x1x8x8xbf16>
    %97 = vector.shape_cast %96 : vector<1x1x8x8xbf16> to vector<8x8xbf16>
    %98 = vector.shape_cast %95 : vector<8x8xbf16> to vector<1x1x8x8xbf16>
    tpu.vector_store %arg8[%c0_57, %c3_58, %c0_59, %c0_60], %98 {strides = array<i32>} : memref<1x4x8x8xbf16, #tpu.memory_space<vmem>>, vector<1x1x8x8xbf16>,
    return
  }
  func.func @transform_0(%arg0: i32, %arg1: i32) -> (i32, i32, i32) {
    %c0_i32 = arith.constant 0 : i32
    %c0_i32_0 = arith.constant 0 : i32
    return %arg0, %arg1, %c0_i32 : i32, i32, i32
  }
  func.func @transform_1(%arg0: i32, %arg1: i32) -> (i32, i32, i32) {
    %c0_i32 = arith.constant 0 : i32
    %c0_i32_0 = arith.constant 0 : i32
    %c0_i32_1 = arith.constant 0 : i32
    return %arg0, %c0_i32, %c0_i32_0 : i32, i32, i32
  }
  func.func @transform_2(%arg0: i32, %arg1: i32) -> (i32, i32) {
    %c0_i32 = arith.constant 0 : i32
    %c0_i32_0 = arith.constant 0 : i32
    %c0_i32_1 = arith.constant 0 : i32
    return %c0_i32, %c0_i32_0 : i32, i32
  }
  func.func @transform_3(%arg0: i32, %arg1: i32) -> (i32, i32) {
    %c0_i32 = arith.constant 0 : i32
    %c0_i32_0 = arith.constant 0 : i32
    %c0_i32_1 = arith.constant 0 : i32
    return %c0_i32, %c0_i32_0 : i32, i32
  }
  func.func @transform_4(%arg0: i32, %arg1: i32) -> (i32, i32, i32, i32) {
    %c0_i32 = arith.constant 0 : i32
    %c0_i32_0 = arith.constant 0 : i32
    %c0_i32_1 = arith.constant 0 : i32
    return %arg0, %c0_i32, %arg1, %c0_i32_0 : i32, i32, i32, i32
  }
  func.func @transform_5(%arg0: i32, %arg1: i32) -> (i32, i32, i32, i32) {
    %c0_i32 = arith.constant 0 : i32
    %c0_i32_0 = arith.constant 0 : i32
    %c0_i32_1 = arith.constant 0 : i32
    return %arg0, %c0_i32, %arg1, %c0_i32_0 : i32, i32, i32, i32
  }
  func.func @transform_6(%arg0: i32, %arg1: i32) -> (i32, i32, i32, i32) {
    %c0_i32 = arith.constant 0 : i32
    %c0_i32_0 = arith.constant 0 : i32
    %c0_i32_1 = arith.constant 0 : i32
    return %arg0, %c0_i32, %arg1, %c0_i32_0 : i32, i32, i32, i32
  }
}

</mosaic_0001>

<bundles_post_ra>
// kernel: tpu_custom_call.1
= control target key start
LH: loop header
LB: loop body
LE: loop exit
PB: predicated region body
PF: predicated region fallthrough
CT: control target
= control target key end

     0   :  { %12 = vsyncpa [#allocation3], 0  ;;  %s1262_s0 = inlined_call_operand.vmem [shape: f32[2,8,32], index: 0, kind: input, shape index: {}]   ;;  %s1263_s1 = inlined_call_operand.vmem [shape: f32[2,6,32], index: 1, kind: input, shape index: {}]   ;;  %s1264_s2 = inlined_call_operand.vmem [shape: bf16[32,96], index: 2, kind: input, shape index: {}]   ;;  %s1265_s3 = inlined_call_operand.vmem [shape: f32[1,96], index: 3, kind: input, shape index: {}]   ;;  %s1266_s4 = inlined_call_operand.hbm [shape: bf16[2,4,8,8], index: 4, kind: output, shape index: {0}]   ;;  %s1267_s5 = inlined_call_operand.hbm [shape: bf16[2,4,8,8], index: 5, kind: output, shape index: {1}]   ;;  %s1268_s6 = inlined_call_operand.hbm [shape: bf16[2,4,8,8], index: 6, kind: output, shape index: {2}]  }
   0x1   :  { %14 = vsyncpa [#allocation3 + $0x1], 0 }
   0x2   :  { %15 = vsyncpa [#allocation5], 0 }
   0x3   :  { %17 = vsyncpa [#allocation5 + $0x1], 0  ;;  %s1009_s21 = smov 0   ;;  %s1011_s22 = smov 0  }
   0x4   :  { %s1013_s23 = smov 0   ;;  %s1015_s24 = smov 0  }
   0x5   :  { %s1017_s25 = smov 0   ;;  %s1019_s26 = smov 0  }
   0x6 LB: > { %s682_s27 = sadd.s32 4294967295, %s955_s26   ;;  %s1269_s28 = sadd.s32 4294967294, %s955_s26   ;;  %s955_s26 = sphi %s1019_s26, %s23_s26   ;;  %s951_s25 = sphi %s1017_s25, %s1285_s25   ;;  %s947_s24 = sphi %s1015_s24, %s1284_s24   ;;  %s943_s23 = sphi %s1013_s23, %s1283_s23   ;;  %s939_s22 = sphi %s1011_s22, %s1282_s22   ;;  %s935_s21 = sphi %s1009_s21, %s1281_s21  }
   0x7   : > { %s35_s29 = sadd.s32 1, %s951_s25  ;;  %s140_s30 = sadd.s32 1, %s943_s23 }
   0x8   : > { %p37_p0 = scmp.ge.s32.totalorder %s35_s29, 2  ;;  %p150_p1 = scmp.ne.s32.totalorder %s943_s23, %s939_s22 }
   0x9   : > { %p151_p2 = scmp.eq.s32.totalorder %s682_s27, 1  ;;  %p156_p3 = scmp.ne.s32.totalorder %s939_s22, %s935_s21 }
   0xa   : > { %s1287_s29 = smov (%p37_p0, %s35_s29), 0  ;;  %p157_p5 = scmp.eq.s32.totalorder %s1269_s28, 1 }
   0xb   : > { %p1051_p4 = por %p151_p2, %p150_p1  ;;  %s135_s8 = ssub.s32 %s951_s25, %s1287_s29 }
   0xc   : > { %p686_p6 = scmp.ge.s32.totalorder %s955_s26, 1  ;;  %p138_p7 = scmp.eq.s32.totalorder %s135_s8, 0 }
   0xd   : > { %p1060_p8 = por %p157_p5, %p156_p3  ;;  %p254_p9 = scmp.lt.s32.totalorder %s955_s26, 3 }
   0xe   : > { %s1066_s10 = scalar_select %p138_p7, %s943_s23, %s140_s30  }
   0xf   : > { %p255_p10 = pnand %p686_p6, %p254_p9 }
  0x10   : > { %p300_p11 = scmp.lt.s32.totalorder (!%p255_p10), %s947_s24, 1  ;;  %vm314_vm0 = vcmask (!%p255_p10), 261120   ;;  %v813_v7 = vld [vmem:[%s1264_s2] sm:$0xff] (!%p255_p10)   ;;  %v957_v8 = vmov (!%p255_p10), 0.0   ;;  %vm958_vm1 = vmmov (!%p255_p10), 0   ;;  %v814_v9 = vld [vmem:[%s1264_s2 + $0x8] sm:$0xff] (!%p255_p10)   ;;  %v330_v12 = vlaneseq (!%p255_p10) }
  0x11   : > { %258 = sbr.rel (%p255_p10) target bundleno = 752 (0x2f0), region = 36  ;;  %726 = vmatprep.subr.bf16.mxu0 (!%p255_p10), %v957_v8  ;;  %730 = vmatprep.mubr.msk.bf16.mxu0 (!%p255_p10), %vm958_vm1, %v957_v8  ;;  %v692_v26 = vld [vmem:[%s1265_s3] ss:$0 sm:$0xff] (!%p255_p10)  ;;  %vm409_vm2 = vcmask (!%p255_p10), 60416   ;;  %s960_s16 = smov (!%p255_p10), 96  }
  0x12   : > { %727 = vmatpush3.bf16.msra.mxu0 (!%p255_p10), %v813_v7  ;;  %v331_v14 = vshrl.u32 (!%p255_p10), %v330_v12, 7  ;;  %s961_s18 = smov (!%p255_p10), 88   ;;  %s962_s19 = smov (!%p255_p10), 104  }
  0x13   : > { %728 = vmatprep.subr.bf16.mxu0 (!%p255_p10), %v957_v8  ;;  %s963_s20 = smov (!%p255_p10), 72   ;;  %s1271_s30 = smov (!%p255_p10), 64  }
  0x14   : > { %v332_v17 = vsub.s32 (!%p255_p10), 1, %v331_v14  ;;  %v337_v18 = vsub.s32 (!%p255_p10), 0, %v331_v14  ;;  %s967_s13 = smov (!%p255_p10), 120  }
  0x16   : > { %729 = vmatpush3.bf16.msra.mxu0 (!%p255_p10), %v814_v9 }
  0x18   : > { %s301_s11 = scalar_select %p300_p11, %s947_s24, 1 }
  0x1a   : > { %s690_s12 = sshll.u32 %s301_s11, 3  ;;  %s966_s11 = smov 48  }
  0x1b   : > { %s306_s15 = scalar_lea.vmem %s1262_s0, %s690_s12  ;;  %s310_s8 = scalar_lea.vmem %s1263_s1, %s690_s12 }
  0x1c   : > { %v312_v0 = vld [vmem:[%s306_s15] sm:$0xff]  ;;  %s1270_s12 = sand.u32 1, %s939_s22   ;;  %s959_s15 = smov 80  }
  0x1d   : > { %v315_v1 = vsel %vm314_vm0, %v312_v0, 0.0  ;;  %v313_v15 = vld [vmem:[%s310_s8] sm:$0x3f]  ;;  %s1091_s14 = sshll.u32 %s1270_s12, 4  ;;  %s965_s8 = smov 56  }
  0x1e   : > { %316 = vadd.xlane.f32.xlu0 %v315_v1  ;;  %v329_v16 = vadd.f32 1.0, %v313_v15  ;;  %v338_v21 = vrot.slane %v313_v15, %v337_v18  ;;  %s1094_s17 = scalar_lea.vmem [#allocation2], %s1091_s14 }
  0x20   : > { %v333_v19 = vrot.slane %v329_v16, %v332_v17 }
  0xab   : > { %v317_v2 = vpop.xlane.xlu0 %316 }
  0xac   : > { %v319_v3 = vmul.f32 0.03125, %v317_v2 }
  0xae   : > { %v320_v4 = vsub.f32 %v312_v0, %v319_v3 }
  0xb0   : > { %v321_v5 = vmul.f32 %v320_v4, %v320_v4 }
  0xb2   : > { %v322_v6 = vsel %vm314_vm0, %v321_v5, 0.0 }
  0xb3   : > { %323 = vadd.xlane.f32.xlu0 %v322_v6 }
 0x140   : > { %v324_v10 = vpop.xlane.xlu0 %323 }
 0x141   : > { %v325_v11 = vmul.f32 0.03125, %v324_v10 }
 0x143   : > { %v326_v13 = vadd.f32 1e-06, %v325_v11 }
 0x145   : > { %815 = vrsqrt.f32 %v326_v13 }
 0x14f   : > { %v816_v20 = vpop.eup %815 }
 0x150   : > { %v328_v22 = vmul.f32 %v816_v20, %v320_v4 }
 0x152   : > { %v334_v23 = vmul.f32 %v333_v19, %v328_v22 }
 0x154   : > { %v339_v24 = vadd.f32 %v338_v21, %v334_v23 }
 0x156   : > { %v340_v25 = vpack.c.bf16 %v339_v24, %v339_v24 }
 0x158   : > { %731 = vmatmul.mubr.msk.bf16.vlgmr.msra.gmra.mrb[0].mxu0 %vm314_vm0, %v340_v25 }
 0x22b   : > { %v401_v27 = vpop.f32.mrb[0].mxu0 }
 0x22c   : > { %v402_v28 = vadd.f32 %v692_v26, %v401_v27  ;;  %v732_v29 = vpop.f32.mrb[1].mxu0 }
 0x22d   : > { %v404_v30 = vpop.f32.mrb[2].mxu0 }
 0x22e   : > { %v407_v31 = vmul.f32 0.35355338, %v402_v28  ;;  %v718_v32 = vpack.c.bf16 %v402_v28, %v402_v28  ;;  %v733_v33 = vpop.f32.mrb[3].mxu0 }
 0x230   : > { %v408_v34 = vpack.c.bf16 %v407_v31, %v407_v31  ;;  %446 = vrot.lane.b32.xlu0 %v718_v32, %s959_s15  ;;  %415 = vrot.lane.b32.xlu1 %v718_v32, %s960_s16  ;;  %s968_s15 = smov 112   ;;  %s969_s16 = smov 40  }
 0x232   : > { %410 = vst.msk [vmem:[%s1094_s17] sm:$0xf] %vm409_vm2, %v408_v34 }
 0x234   : > { %431 = vrot.lane.b32.xlu1 %v718_v32, %s961_s18  ;;  %456 = vrot.lane.b32.xlu0 %v408_v34, %s962_s19  ;;  %s292_s18 = scalar_lea.vmem [#allocation4], %s1091_s14 }
 0x235   : > { %s513_s19 = sshll.u32 %s292_s18, 4  ;;  %s1112_s19 = int_to_ptr.vmem [resolvable:$true] %s513_s19 }
 0x238   : > { %461 = vrot.lane.b32.xlu1 %v718_v32, %s963_s20  ;;  %s1104_s20 = sand.u32 1, %s682_s27  }
 0x23c   : > { %419 = vrot.lane.b32.xlu1 %v718_v32, %s1271_s30 }
 0x240   : > { %436 = vrot.lane.b32.xlu1 %v718_v32, %s965_s8  ;;  %s1107_s8 = sshll.u32 %s947_s24, 8 }
 0x241   : > { %s1118_s27 = scalar_lea.hbm %s1267_s5, %s1107_s8 }
 0x244   : > { %451 = vrot.lane.b32.xlu1 %v718_v32, %s966_s11 }
 0x248   : > { %426 = vrot.lane.b32.xlu1 %v408_v34, %s967_s13 }
 0x24c   : > { %441 = vrot.lane.b32.xlu1 %v408_v34, %s968_s15  ;;  %s817_s15 = scalar_lea.vmem %s1112_s19, 256 }
 0x24d   : > { %p818_p12 = scmp.ne.s32.totalorder %s1112_s19, %s817_s15 }
 0x24f   : > { %p819_p13 = pnand %p818_p12, %p1051_p4 }
 0x250   : > { %466 = vrot.lane.b32.xlu1 %v718_v32, %s969_s16  ;;  %s970_s16 = smov [#allocation4]  }
 0x251   : > { %p820_p0 = pneg %p819_p13  ;;  %s821_s28 = sshll.u32 %s970_s16, 4  ;;  %s822_s28 = int_to_ptr.vmem [resolvable:$false] %s821_s28 }
 0x252   : > { %s823_s12 = scalar_lea.vmem %s822_s28, 512  ;;  %p824_p1 = scmp.lt.s32.totalorder %s1112_s19, %s822_s28 }
 0x253   : > { %p825_p2 = scmp.lt.s32.totalorder %s823_s12, %s817_s15 }
 0x255   : > { %p826_p3 = por %p825_p2, %p824_p1 }
 0x257   : > { %p827_p5 = pnand %p826_p3, %p820_p0 }
 0x2a2   : > { %v447_v35 = vpop.permute.xlu0 %446  ;;  %v416_v36 = vpop.permute.xlu1 %415 }
 0x2a3   : > { %702 = vst.msk [vmem:[%s292_s18 + $0x8] sm:$0xf] %vm409_vm2, %v447_v35  ;;  %418 = vst.msk [vmem:[%s292_s18] sm:$0xf] %vm409_vm2, %v416_v36 }
 0x2a6   : > { %v432_v37 = vpop.permute.xlu1 %431  ;;  %v457_v38 = vpop.permute.xlu0 %456 }
 0x2a7   : > { %699 = vst.msk [vmem:[%s292_s18 + $0x4] sm:$0xf] %vm409_vm2, %v432_v37  ;;  %704 = vst.msk [vmem:[%s1094_s17 + $0xc] sm:$0xf] %vm409_vm2, %v457_v38 }
 0x2aa   : > { %v462_v39 = vpop.permute.xlu1 %461 }
 0x2ab   : > { %705 = vst.msk [vmem:[%s292_s18 + $0xc] sm:$0xf] %vm409_vm2, %v462_v39 }
 0x2ac   : > { %830 = shalt.err (!%p827_p5)
}
 0x2ad   : > { %s831_s18 = scalar_lea.hbm %s1118_s27, 256  ;;  %s835_s16 = scalar_lea.hbm %s1267_s5, 512 }
 0x2ae   : > { %p832_p6 = scmp.ne.s32.totalorder %s1118_s27, %s831_s18  ;;  %p836_p10 = scmp.lt.u32.totalorder %s1118_s27, %s1267_s5 }
 0x2af   : > { %p837_p11 = scmp.lt.u32.totalorder %s835_s16, %s831_s18  ;;  %p839_p13 = scmp.lt.u32.totalorder %s831_s18, %s1118_s27 }
 0x2b0   : > { %p833_p7 = pnand %p832_p6, %p1051_p4 }
 0x2b1   : > { %p838_p12 = por %p837_p11, %p836_p10 }
 0x2b2   : > { %p834_p9 = pneg %p833_p7 }
 0x2b3   : > { %p840_p0 = por %p839_p13, %p838_p12 }
 0x2b5   : > { %p841_p1 = pnand %p840_p0, %p834_p9 }
 0x2b7   : > { %844 = shalt.err (!%p841_p1)
}
 0x2b8   : > { %s971_s12 = smov 4   ;;  %s1275_s15 = scalar_lea.sflag [#allocation5], %s1104_s20  ;;  %v420_v40 = vpop.permute.xlu1 %419 }
 0x2b9   : > { %735 = dma.vmem_to_hbm [thread:$0]  (%p1051_p4), %s1112_s19, 256, %s1118_s27, %s1275_s15, %s1271_s30, %s1271_s30, %s971_s12  }
 0x2ba   : > { %s1149_s24 = scalar_lea.vmem [#allocation6], %s1091_s14  ;;  %s496_s18 = sshll.u32 %s1094_s17, 4  ;;  %s1160_s18 = int_to_ptr.vmem [resolvable:$true] %s496_s18 }
 0x2bb   : > { %422 = vst.msk [vmem:[%s1149_s24] sm:$0xf] %vm409_vm2, %v420_v40  ;;  %s1166_s27 = scalar_lea.hbm %s1266_s4, %s1107_s8  ;;  %s1276_s13 = sand.u32 1, %s939_s22  }
 0x2bc   : > { %v437_v41 = vpop.permute.xlu1 %436  ;;  %s1173_s16 = scalar_lea.sflag [#allocation3], %s1276_s13  ;;  %s845_s28 = scalar_lea.vmem %s1160_s18, 256 }
 0x2bd   : > { %700 = vst.msk [vmem:[%s1149_s24 + $0x4] sm:$0xf] %vm409_vm2, %v437_v41  ;;  %p846_p2 = scmp.ne.s32.totalorder %s1160_s18, %s845_s28  ;;  %s972_s15 = smov [#allocation2]  }
 0x2be   : > { %s849_s30 = sshll.u32 %s972_s15, 4  ;;  %s850_s30 = int_to_ptr.vmem [resolvable:$false] %s849_s30 }
 0x2bf   : > { %p847_p3 = pnand %p846_p2, %p1051_p4  ;;  %s851_s14 = scalar_lea.vmem %s850_s30, 512 }
 0x2c0   : > { %v452_v42 = vpop.permute.xlu1 %451  ;;  %p852_p6 = scmp.lt.s32.totalorder %s1160_s18, %s850_s30  ;;  %p853_p7 = scmp.lt.s32.totalorder %s851_s14, %s845_s28 }
 0x2c1   : > { %703 = vst.msk [vmem:[%s1149_s24 + $0x8] sm:$0xf] %vm409_vm2, %v452_v42  ;;  %p848_p5 = pneg %p847_p3 }
 0x2c2   : > { %p854_p9 = por %p853_p7, %p852_p6 }
 0x2c4   : > { %v427_v43 = vpop.permute.xlu1 %426  ;;  %p855_p10 = pnand %p854_p9, %p848_p5 }
 0x2c5   : > { %698 = vst.msk [vmem:[%s1094_s17 + $0x4] sm:$0xf] %vm409_vm2, %v427_v43 }
 0x2c8   : > { %v442_v44 = vpop.permute.xlu1 %441 }
 0x2c9   : > { %701 = vst.msk [vmem:[%s1094_s17 + $0x8] sm:$0xf] %vm409_vm2, %v442_v44 }
 0x2ca   : > { %858 = shalt.err (!%p855_p10)
}
 0x2cb   : > { %s859_s17 = scalar_lea.hbm %s1166_s27, 256  ;;  %s863_s15 = scalar_lea.hbm %s1266_s4, 512 }
 0x2cc   : > { %p860_p11 = scmp.ne.s32.totalorder %s1166_s27, %s859_s17  ;;  %p864_p0 = scmp.lt.u32.totalorder %s1166_s27, %s1266_s4 }
 0x2cd   : > { %p865_p1 = scmp.lt.u32.totalorder %s863_s15, %s859_s17  ;;  %p867_p3 = scmp.lt.u32.totalorder %s859_s17, %s1166_s27 }
 0x2ce   : > { %p861_p12 = pnand %p860_p11, %p1051_p4 }
 0x2cf   : > { %p866_p2 = por %p865_p1, %p864_p0 }
 0x2d0   : > { %p862_p13 = pneg %p861_p12 }
 0x2d1   : > { %p868_p5 = por %p867_p3, %p866_p2 }
 0x2d3   : > { %p869_p6 = pnand %p868_p5, %p862_p13 }
 0x2d5   : > { %872 = shalt.err (!%p869_p6)
}
 0x2d6   : > { %s1277_s28 = smov 64   ;;  %s1278_s11 = sshll.u32 %s1149_s24, 4  ;;  %v467_v45 = vpop.permute.xlu1 %466  ;;  %s1202_s11 = int_to_ptr.vmem [resolvable:$true] %s1278_s11 }
 0x2d7   : > { %734 = dma.vmem_to_hbm [thread:$0]  (%p1051_p4), %s1160_s18, 256, %s1166_s27, %s1173_s16, %s1277_s28, %s1277_s28, %s971_s12  }
 0x2d8   : > { %s1208_s19 = scalar_lea.hbm %s1268_s6, %s1107_s8  ;;  %706 = vst.msk [vmem:[%s1149_s24 + $0xc] sm:$0xf] %vm409_vm2, %v467_v45  ;;  %s873_s13 = scalar_lea.vmem %s1202_s11, 256 }
 0x2d9   : > { %p874_p7 = scmp.ne.s32.totalorder %s1202_s11, %s873_s13  ;;  %s973_s18 = smov [#allocation6]  }
 0x2da   : > { %s877_s27 = sshll.u32 %s973_s18, 4  ;;  %s878_s27 = int_to_ptr.vmem [resolvable:$false] %s877_s27 }
 0x2db   : > { %p875_p9 = pnand %p874_p7, %p1051_p4  ;;  %s879_s16 = scalar_lea.vmem %s878_s27, 512 }
 0x2dc   : > { %p880_p11 = scmp.lt.s32.totalorder %s1202_s11, %s878_s27  ;;  %p881_p12 = scmp.lt.s32.totalorder %s879_s16, %s873_s13 }
 0x2dd   : > { %p876_p10 = pneg %p875_p9 }
 0x2de   : > { %p882_p13 = por %p881_p12, %p880_p11 }
 0x2e0   : > { %p883_p0 = pnand %p882_p13, %p876_p10 }
 0x2e2   : > { %886 = shalt.err (!%p883_p0)
}
 0x2e3   : > { %s887_s8 = scalar_lea.hbm %s1208_s19, 256  ;;  %s891_s30 = scalar_lea.hbm %s1268_s6, 512 }
 0x2e4   : > { %p888_p1 = scmp.ne.s32.totalorder %s1208_s19, %s887_s8  ;;  %p892_p5 = scmp.lt.u32.totalorder %s1208_s19, %s1268_s6 }
 0x2e5   : > { %p893_p6 = scmp.lt.u32.totalorder %s891_s30, %s887_s8  ;;  %p895_p9 = scmp.lt.u32.totalorder %s887_s8, %s1208_s19 }
 0x2e6   : > { %p889_p2 = pnand %p888_p1, %p1051_p4 }
 0x2e7   : > { %p894_p7 = por %p893_p6, %p892_p5 }
 0x2e8   : > { %p890_p3 = pneg %p889_p2 }
 0x2e9   : > { %p896_p10 = por %p895_p9, %p894_p7 }
 0x2eb   : > { %p897_p11 = pnand %p896_p10, %p890_p3 }
 0x2ed   : > { %900 = shalt.err (!%p897_p11)
}
 0x2ee   : > { %s1279_s13 = scalar_lea.sflag [#allocation5], %s1104_s20 }
 0x2ef   : > { %736 = dma.vmem_to_hbm [thread:$0]  (%p1051_p4), %s1202_s11, 256, %s1208_s19, %s1279_s13, %s1277_s28, %s1277_s28, %s971_s12  }
 0x2f0 PF: > { %p750_p12 = scmp.ge.s32.totalorder %s955_s26, 2  ;;  %s545_s18 = sand.u32 1, %s935_s21  }
 0x2f1   : > { %s546_s27 = scalar_lea.sflag [#allocation3], %s545_s18 }
 0x2f2   : > { %p741_p13 = pnand %p750_p12, %p1060_p8 }
 0x2f4   : > { %926 = dma.done.wait (!%p741_p13), %s546_s27, 256  }
 0x2f5   : > { %928 = vsyncadd (!%p741_p13), %s546_s27, 4294967040  ;;  %s1280_s7 = sadd.s32 4294967294, %s955_s26  }
 0x2f6   : > { %s554_s16 = sand.u32 1, %s1280_s7  }
 0x2f7   : > { %s555_s8 = scalar_lea.sflag [#allocation5], %s554_s16 }
 0x2f8   : > { %930 = dma.done.wait (!%p741_p13), %s555_s8, 512  }
 0x2f9   : > { %932 = vsyncadd (!%p741_p13), %s555_s8, 4294966784  ;;  %s23_s26 = sadd.s32 1, %s955_s26   ;;  %s1281_s21 = smov %s939_s22 }
 0x2fa   : > { %p20_p4 = scmp.ge.s32.totalorder %s23_s26, 4   ;;  %s1282_s22 = smov %s943_s23 }
 0x2fb   : > { %s1283_s23 = smov %s1066_s10  ;;  %s1284_s24 = smov %s951_s25 }
 0x2fc   : > { %s1285_s25 = smov %s1287_s29  ;;  %22 = sbr.rel (!%p20_p4) target bundleno = 6 (0x6), region = 115 }
 0x303   :  { %569 = vsyncpa [#allocation3], 1 }
 0x304   :  { %571 = vsyncpa [#allocation3 + $0x1], 1 }
 0x305   :  { %572 = vsyncpa [#allocation5], 1 }
 0x306   :  { %574 = vsyncpa [#allocation5 + $0x1], 1 }

</bundles_post_ra>
